<compile_context>
chip_gen: v6e
topology: v6e:2x2x1
jax: 0.10.0
libtpu: 0.0.40
codegen_flags: <defaults>
</compile_context>

<pallas_src>
import jax
import jax.numpy as jnp
from jax import lax
from jax.experimental import pallas as pl
from jax.experimental.pallas import tpu as pltpu


# ----------------------------------------------------------------------------
# Kernel: one grid step = one full 4-layer MLP evaluation, weights VMEM-resident.
# ----------------------------------------------------------------------------
def _simple_full_nn_kernel(x_ref, w1_ref, b1_ref, w2_ref, b2_ref,
                           w3_ref, b3_ref, w4_ref, b4_ref, out_ref):
    # Layer 1: squeeze + transpose + matmul fused as broadcast-multiply-reduce (VPU only).
    #   x:(n,B,1) * w1:(n,1,H) -> (n,B,H);  sum over n (major axis) -> (B,H).  Exact f32.
    x3 = x_ref[0]                                                    # (n, B, 1); step dim squeezed
    h = jnp.tanh(jnp.sum(x3 * w1_ref[...], axis=0) + b1_ref[...])    # (B, H) f32

    # Layers 2, 3: lane-dense (B,H) @ (H,H) on the MXU, bf16 operands, f32 accumulation.
    h = jnp.tanh(jnp.dot(h.astype(jnp.bfloat16), w2_ref[...],
                         preferred_element_type=jnp.float32) + b2_ref[...])
    h = jnp.tanh(jnp.dot(h.astype(jnp.bfloat16), w3_ref[...],
                         preferred_element_type=jnp.float32) + b3_ref[...])

    # Layer 4: (n,H) contracted with (B,H) over H -> (n,B); writes module-native layout
    # directly.  b4 is pre-broadcast to (n,B): plain VPU add.
    out_nb = lax.dot_general(w4_ref[...], h.astype(jnp.bfloat16),
                             dimension_numbers=(((1,), (1,)), ((), ())),
                             preferred_element_type=jnp.float32) + b4_ref[...]
    out_ref[...] = out_nb[None].astype(out_ref.dtype)                # (1, n, B)


def _mlp_pallas(xs, params):
    """xs: (S, n, B, 1) f32 -> (S, n, B) f32.  Weights fetched once, resident across the grid."""
    S, n, B, _one = xs.shape
    H = params["w2"].shape[0]

    args = (xs,
            params["w1"], params["b1"],
            params["w2"], params["b2"],
            params["w3"], params["b3"],
            params["w4"], params["b4"])

    in_specs = [
        pl.BlockSpec((1, n, B, 1), lambda s: (s, 0, 0, 0)),   # x: blocked along steps
        pl.BlockSpec((n, 1, H),    lambda s: (0, 0, 0)),      # w1   (constant index maps:
        pl.BlockSpec((1, H),       lambda s: (0, 0)),         # b1    weights DMA'd once and
        pl.BlockSpec((H, H),       lambda s: (0, 0)),         # w2    stay VMEM-resident)
        pl.BlockSpec((1, H),       lambda s: (0, 0)),         # b2
        pl.BlockSpec((H, H),       lambda s: (0, 0)),         # w3
        pl.BlockSpec((1, H),       lambda s: (0, 0)),         # b3
        pl.BlockSpec((n, H),       lambda s: (0, 0)),         # w4
        pl.BlockSpec((n, B),       lambda s: (0, 0)),         # b4 (pre-broadcast)
    ]
    out_specs = pl.BlockSpec((1, n, B), lambda s: (s, 0, 0))

    flops = S * 2 * (n * B * H + 2 * B * H * H + n * H * B)
    transcendentals = S * 3 * B * H
    weight_bytes = sum(int(a.size) * a.dtype.itemsize for a in args[1:])
    bytes_accessed = weight_bytes + S * (n * B * 4 + n * B * 4)

    return pl.pallas_call(
        _simple_full_nn_kernel,
        out_shape=jax.ShapeDtypeStruct((S, n, B), jnp.float32),
        grid=(S,),
        in_specs=in_specs,
        out_specs=out_specs,
        compiler_params=pltpu.CompilerParams(dimension_semantics=("parallel",)),
        cost_estimate=pl.CostEstimate(flops=flops,
                                      transcendentals=transcendentals,
                                      bytes_accessed=bytes_accessed),
    )(*args)


@jax.jit
def simple_full_nn_forward(t, x, params):
    """Exact PyTorch SimpleFullNN.forward semantics: x (n,B,1) -> (n,1,B). `t` is unused."""
    del t
    outs = _mlp_pallas(x[None], params)     # (n,B,1)->(1,n,B,1) is a free leading-dim view
    return outs[0][:, None, :]              # (1,n,B)->(n,B)->(n,1,B); output layout is XLA's to pick


@jax.jit
def simple_full_nn_forward_steps(t, xs, params):
    """Amortized path: xs (S,n,B,1) -> (S,n,1,B) in ONE launch; weights DMA'd once."""
    del t
    outs = _mlp_pallas(xs, params)          # (S, n, B)
    return outs[:, :, None, :]              # (S, n, 1, B)


# ----------------------------------------------------------------------------
# Parameter construction (nn.Linear default init law), then one-time padding of
# the hidden dim to a lane-dense H_PAD and bf16 cast of the MXU-layer weights.
# ----------------------------------------------------------------------------
def init_raw_params(key, n, h):
    """Unpadded f32 params, weights stored as (fan_in, fan_out)."""
    ks = jax.random.split(key, 8)

    def linear(kw, kb, fan_in, fan_out):
        bound = 1.0 / jnp.sqrt(jnp.float32(fan_in))
        w = jax.random.uniform(kw, (fan_in, fan_out), jnp.float32, -bound, bound)
        b = jax.random.uniform(kb, (fan_out,), jnp.float32, -bound, bound)
        return w, b

    w1, b1 = linear(ks[0], ks[1], n, h)
    w2, b2 = linear(ks[2], ks[3], h, h)
    w3, b3 = linear(ks[4], ks[5], h, h)
    w4, b4 = linear(ks[6], ks[7], h, n)
    return {"w1": w1, "b1": b1, "w2": w2, "b2": b2,
            "w3": w3, "b3": b3, "w4": w4, "b4": b4}


def pad_params_for_kernel(raw, n, h, batch, h_pad=None):
    """Zero-pad hidden dims to h_pad (multiple of 128) once; bf16 for the MXU-layer weights."""
    if h_pad is None:
        h_pad = max(128, ((h + 127) // 128) * 128)

    def pad2(a, rows, cols, dtype=jnp.float32):
        out = jnp.zeros((rows, cols), jnp.float32)
        out = out.at[:a.shape[0], :a.shape[1]].set(a)
        return out.astype(dtype)                      # zero pads cast exactly in bf16

    return {
        "w1": pad2(raw["w1"], n, h_pad)[:, None, :],              # (n, 1, H)  f32
        "b1": pad2(raw["b1"][None, :], 1, h_pad),                 # (1, H)     f32
        "w2": pad2(raw["w2"], h_pad, h_pad, jnp.bfloat16),        # (H, H)     bf16
        "b2": pad2(raw["b2"][None, :], 1, h_pad),                 # (1, H)     f32
        "w3": pad2(raw["w3"], h_pad, h_pad, jnp.bfloat16),        # (H, H)     bf16
        "b3": pad2(raw["b3"][None, :], 1, h_pad),                 # (1, H)     f32
        "w4": pad2(raw["w4"].T, n, h_pad, jnp.bfloat16),          # (n, H)     bf16
        "b4": jnp.broadcast_to(raw["b4"][:, None],                # (n, B)     f32 (pre-broadcast)
                               (n, batch)).astype(jnp.float32),
    }


# ----------------------------------------------------------------------------
# Pure-JAX references.
# ----------------------------------------------------------------------------
def _reference_forward_f32(t, x, raw):
    """Ground-truth f32 PyTorch semantics (full-precision matmuls)."""
    del t
    hp = jax.lax.Precision.HIGHEST
    xb = x[:, :, 0].T                                             # (B, n)
    h1 = jnp.tanh(jnp.dot(xb, raw["w1"], precision=hp) + raw["b1"])
    h2 = jnp.tanh(jnp.dot(h1, raw["w2"], precision=hp) + raw["b2"])
    h3 = jnp.tanh(jnp.dot(h2, raw["w3"], precision=hp) + raw["b3"])
    out = jnp.dot(h3, raw["w4"], precision=hp) + raw["b4"]        # (B, n)
    return out.T[:, None]                                         # (n, 1, B)


def _reference_forward_quantized(t, x, raw):
    """Mirrors the kernel's numerics (f32 layer 1, bf16 operands for layers 2-4, f32 accum)."""
    del t
    bf = jnp.bfloat16
    hp = jax.lax.Precision.HIGHEST
    xb = x[:, :, 0].T
    h1 = jnp.tanh(jnp.dot(xb, raw["w1"], precision=hp) + raw["b1"])
    h2 = jnp.tanh(jnp.dot(h1.astype(bf), raw["w2"].astype(bf),
                          preferred_element_type=jnp.float32) + raw["b2"])
    h3 = jnp.tanh(jnp.dot(h2.astype(bf), raw["w3"].astype(bf),
                          preferred_element_type=jnp.float32) + raw["b3"])
    out = jnp.dot(h3.astype(bf), raw["w4"].astype(bf),
                  preferred_element_type=jnp.float32) + raw["b4"]
    return out.T[:, None]


if __name__ == "__main__":
    n, h, batch, steps = 16, 32, 8, 4
    key = jax.random.PRNGKey(0)
    k_x, k_xs, k_p = jax.random.split(key, 3)

    # Module-native input layouts.
    x = jax.random.normal(k_x, (n, batch, 1), dtype=jnp.float32)
    xs = jax.random.normal(k_xs, (steps, n, batch, 1), dtype=jnp.float32)
    t = jnp.float32(0.0)  # unused by forward, kept for signature parity

    raw_params = init_raw_params(k_p, n, h)
    params = pad_params_for_kernel(raw_params, n, h, batch)

    # --- single-call path (exact module semantics) -------------------------
    out = jax.block_until_ready(simple_full_nn_forward(t, x, params))
    assert out.shape == (n, 1, batch), out.shape

    ref_q = _reference_forward_quantized(t, x, raw_params)
    ref_f = _reference_forward_f32(t, x, raw_params)
    # Tight check against the like-for-like (bf16-weight) reference ...
    assert jnp.allclose(out, ref_q, rtol=5e-3, atol=5e-3), \
        float(jnp.max(jnp.abs(out - ref_q)))
    # ... and a looser sanity check against full-f32 semantics (bf16 w2/w3/w4 quantization budget).
    assert jnp.allclose(out, ref_f, rtol=3e-2, atol=3e-2), \
        float(jnp.max(jnp.abs(out - ref_f)))

    # --- multi-step path: launch + weight DMA amortized over the grid ------
    outs = jax.block_until_ready(simple_full_nn_forward_steps(t, xs, params))
    assert outs.shape == (steps, n, 1, batch), outs.shape
    for i in range(steps):
        ref_i = _reference_forward_quantized(t, xs[i], raw_params)
        assert jnp.allclose(outs[i], ref_i, rtol=5e-3, atol=5e-3), \
            (i, float(jnp.max(jnp.abs(outs[i] - ref_i))))

    print("KERNEL_OK")
</pallas_src>

<mosaic_0001>
module attributes {stable_mosaic.version = 11 : i64} {
  func.func @_simple_full_nn_kernel(%arg0: i32, %arg1: memref<1x16x8x1xf32, #tpu.memory_space<vmem>>, %arg2: memref<16x1x128xf32, #tpu.memory_space<vmem>>, %arg3: memref<1x128xf32, #tpu.memory_space<vmem>>, %arg4: memref<128x128xbf16, #tpu.memory_space<vmem>>, %arg5: memref<1x128xf32, #tpu.memory_space<vmem>>, %arg6: memref<128x128xbf16, #tpu.memory_space<vmem>>, %arg7: memref<1x128xf32, #tpu.memory_space<vmem>>, %arg8: memref<16x128xbf16, #tpu.memory_space<vmem>>, %arg9: memref<16x8xf32, #tpu.memory_space<vmem>>, %arg10: memref<1x16x8xf32, #tpu.memory_space<vmem>>) attributes {dimension_semantics = [#tpu.dimension_semantics<parallel>], iteration_bounds = array<i64: 1>, scalar_prefetch = 0 : i64, scratch_operands = 0 : i64, tpu.core_type = #tpu.core_type<tc>, window_params = [{transform_indices = @transform_0, window_bounds = array<i64: 1, 16, 8, 1>}, {pipeline_mode = #tpu.pipeline_mode<synchronous>, transform_indices = @transform_1, window_bounds = array<i64: 16, 1, 128>}, {pipeline_mode = #tpu.pipeline_mode<synchronous>, transform_indices = @transform_2, window_bounds = array<i64: 1, 128>}, {pipeline_mode = #tpu.pipeline_mode<synchronous>, transform_indices = @transform_3, window_bounds = array<i64: 128, 128>}, {pipeline_mode = #tpu.pipeline_mode<synchronous>, transform_indices = @transform_4, window_bounds = array<i64: 1, 128>}, {pipeline_mode = #tpu.pipeline_mode<synchronous>, transform_indices = @transform_5, window_bounds = array<i64: 128, 128>}, {pipeline_mode = #tpu.pipeline_mode<synchronous>, transform_indices = @transform_6, window_bounds = array<i64: 1, 128>}, {pipeline_mode = #tpu.pipeline_mode<synchronous>, transform_indices = @transform_7, window_bounds = array<i64: 16, 128>}, {pipeline_mode = #tpu.pipeline_mode<synchronous>, transform_indices = @transform_8, window_bounds = array<i64: 16, 8>}, {transform_indices = @transform_9, window_bounds = array<i64: 1, 16, 8>}]} {
    %c0 = arith.constant 0 : index
    %c0_0 = arith.constant 0 : index
    %c0_1 = arith.constant 0 : index
    %c0_2 = arith.constant 0 : index
    %0 = vector.load %arg1[%c0, %c0_0, %c0_1, %c0_2] : memref<1x16x8x1xf32, #tpu.memory_space<vmem>>, vector<1x16x8x1xf32>
    %1 = vector.shape_cast %0 : vector<1x16x8x1xf32> to vector<16x8x1xf32>
    %c0_3 = arith.constant 0 : index
    %c0_4 = arith.constant 0 : index
    %c0_5 = arith.constant 0 : index
    %2 = vector.load %arg2[%c0_3, %c0_4, %c0_5] : memref<16x1x128xf32, #tpu.memory_space<vmem>>, vector<16x1x128xf32>
    %3 = vector.broadcast %1 : vector<16x8x1xf32> to vector<16x8x128xf32>
    %4 = vector.broadcast %2 : vector<16x1x128xf32> to vector<16x8x128xf32>
    %5 = arith.mulf %3, %4 : vector<16x8x128xf32>
    %cst = arith.constant dense<0.000000e+00> : vector<8x128xf32>
    %6 = vector.multi_reduction <add>, %5, %cst [0] : vector<16x8x128xf32> to vector<8x128xf32>
    %c0_6 = arith.constant 0 : index
    %c0_7 = arith.constant 0 : index
    %7 = vector.load %arg3[%c0_6, %c0_7] : memref<1x128xf32, #tpu.memory_space<vmem>>, vector<1x128xf32>
    %8 = vector.broadcast %7 : vector<1x128xf32> to vector<8x128xf32>
    %9 = arith.addf %6, %8 : vector<8x128xf32>
    %10 = math.tanh %9 : vector<8x128xf32>
    %11 = arith.truncf %10 : vector<8x128xf32> to vector<8x128xbf16>
    %c0_8 = arith.constant 0 : index
    %c0_9 = arith.constant 0 : index
    %12 = vector.load %arg4[%c0_8, %c0_9] : memref<128x128xbf16, #tpu.memory_space<vmem>>, vector<128x128xbf16>
    %cst_10 = arith.constant dense<0.000000e+00> : vector<8x128xf32>
    %13 = tpu.matmul %11, %12, %cst_10 {dimension_numbers = #tpu.dot_dimension_numbers<[1], [0], [0], [1], [0, 0, 1, 1], [], []>} : vector<8x128xbf16>, vector<128x128xbf16>, vector<8x128xf32> -> vector<8x128xf32>
    %c0_11 = arith.constant 0 : index
    %c0_12 = arith.constant 0 : index
    %14 = vector.load %arg5[%c0_11, %c0_12] : memref<1x128xf32, #tpu.memory_space<vmem>>, vector<1x128xf32>
    %15 = vector.broadcast %14 : vector<1x128xf32> to vector<8x128xf32>
    %16 = arith.addf %13, %15 : vector<8x128xf32>
    %17 = math.tanh %16 : vector<8x128xf32>
    %18 = arith.truncf %17 : vector<8x128xf32> to vector<8x128xbf16>
    %c0_13 = arith.constant 0 : index
    %c0_14 = arith.constant 0 : index
    %19 = vector.load %arg6[%c0_13, %c0_14] : memref<128x128xbf16, #tpu.memory_space<vmem>>, vector<128x128xbf16>
    %cst_15 = arith.constant dense<0.000000e+00> : vector<8x128xf32>
    %20 = tpu.matmul %18, %19, %cst_15 {dimension_numbers = #tpu.dot_dimension_numbers<[1], [0], [0], [1], [0, 0, 1, 1], [], []>} : vector<8x128xbf16>, vector<128x128xbf16>, vector<8x128xf32> -> vector<8x128xf32>
    %c0_16 = arith.constant 0 : index
    %c0_17 = arith.constant 0 : index
    %21 = vector.load %arg7[%c0_16, %c0_17] : memref<1x128xf32, #tpu.memory_space<vmem>>, vector<1x128xf32>
    %22 = vector.broadcast %21 : vector<1x128xf32> to vector<8x128xf32>
    %23 = arith.addf %20, %22 : vector<8x128xf32>
    %24 = math.tanh %23 : vector<8x128xf32>
    %c0_18 = arith.constant 0 : index
    %c0_19 = arith.constant 0 : index
    %25 = vector.load %arg8[%c0_18, %c0_19] : memref<16x128xbf16, #tpu.memory_space<vmem>>, vector<16x128xbf16>
    %26 = arith.truncf %24 : vector<8x128xf32> to vector<8x128xbf16>
    %cst_20 = arith.constant dense<0.000000e+00> : vector<16x8xf32>
    %27 = tpu.matmul %25, %26, %cst_20 {dimension_numbers = #tpu.dot_dimension_numbers<[1], [1], [0], [0], [0, 0, 1, 0], [], []>} : vector<16x128xbf16>, vector<8x128xbf16>, vector<16x8xf32> -> vector<16x8xf32>
    %c0_21 = arith.constant 0 : index
    %c0_22 = arith.constant 0 : index
    %28 = vector.load %arg9[%c0_21, %c0_22] : memref<16x8xf32, #tpu.memory_space<vmem>>, vector<16x8xf32>
    %29 = arith.addf %27, %28 : vector<16x8xf32>
    %30 = vector.shape_cast %29 : vector<16x8xf32> to vector<1x16x8xf32>
    %c0_23 = arith.constant 0 : index
    %c0_24 = arith.constant 0 : index
    %c0_25 = arith.constant 0 : index
    %31 = vector.load %arg10[%c0_23, %c0_24, %c0_25] : memref<1x16x8xf32, #tpu.memory_space<vmem>>, vector<1x16x8xf32>
    tpu.vector_store %arg10[%c0_23, %c0_24, %c0_25], %30 {strides = array<i32>} : memref<1x16x8xf32, #tpu.memory_space<vmem>>, vector<1x16x8xf32>,
    return
  }
  func.func @transform_0(%arg0: i32) -> (i32, i32, i32, i32) {
    %c0_i32 = arith.constant 0 : i32
    %c0_i32_0 = arith.constant 0 : i32
    %c0_i32_1 = arith.constant 0 : i32
    %c0_i32_2 = arith.constant 0 : i32
    return %arg0, %c0_i32, %c0_i32_0, %c0_i32_1 : i32, i32, i32, i32
  }
  func.func @transform_1(%arg0: i32) -> (i32, i32, i32) {
    %c0_i32 = arith.constant 0 : i32
    %c0_i32_0 = arith.constant 0 : i32
    %c0_i32_1 = arith.constant 0 : i32
    %c0_i32_2 = arith.constant 0 : i32
    return %c0_i32, %c0_i32_0, %c0_i32_1 : i32, i32, i32
  }
  func.func @transform_2(%arg0: i32) -> (i32, i32) {
    %c0_i32 = arith.constant 0 : i32
    %c0_i32_0 = arith.constant 0 : i32
    %c0_i32_1 = arith.constant 0 : i32
    return %c0_i32, %c0_i32_0 : i32, i32
  }
  func.func @transform_3(%arg0: i32) -> (i32, i32) {
    %c0_i32 = arith.constant 0 : i32
    %c0_i32_0 = arith.constant 0 : i32
    %c0_i32_1 = arith.constant 0 : i32
    return %c0_i32, %c0_i32_0 : i32, i32
  }
  func.func @transform_4(%arg0: i32) -> (i32, i32) {
    %c0_i32 = arith.constant 0 : i32
    %c0_i32_0 = arith.constant 0 : i32
    %c0_i32_1 = arith.constant 0 : i32
    return %c0_i32, %c0_i32_0 : i32, i32
  }
  func.func @transform_5(%arg0: i32) -> (i32, i32) {
    %c0_i32 = arith.constant 0 : i32
    %c0_i32_0 = arith.constant 0 : i32
    %c0_i32_1 = arith.constant 0 : i32
    return %c0_i32, %c0_i32_0 : i32, i32
  }
  func.func @transform_6(%arg0: i32) -> (i32, i32) {
    %c0_i32 = arith.constant 0 : i32
    %c0_i32_0 = arith.constant 0 : i32
    %c0_i32_1 = arith.constant 0 : i32
    return %c0_i32, %c0_i32_0 : i32, i32
  }
  func.func @transform_7(%arg0: i32) -> (i32, i32) {
    %c0_i32 = arith.constant 0 : i32
    %c0_i32_0 = arith.constant 0 : i32
    %c0_i32_1 = arith.constant 0 : i32
    return %c0_i32, %c0_i32_0 : i32, i32
  }
  func.func @transform_8(%arg0: i32) -> (i32, i32) {
    %c0_i32 = arith.constant 0 : i32
    %c0_i32_0 = arith.constant 0 : i32
    %c0_i32_1 = arith.constant 0 : i32
    return %c0_i32, %c0_i32_0 : i32, i32
  }
  func.func @transform_9(%arg0: i32) -> (i32, i32, i32) {
    %c0_i32 = arith.constant 0 : i32
    %c0_i32_0 = arith.constant 0 : i32
    %c0_i32_1 = arith.constant 0 : i32
    return %arg0, %c0_i32, %c0_i32_0 : i32, i32, i32
  }
}

</mosaic_0001>

<bundles_post_ra>
// kernel: simple_full_nn_forward.1
= control target key start
LH: loop header
LB: loop body
LE: loop exit
PB: predicated region body
PF: predicated region fallthrough
CT: control target
= control target key end

     0   :  { %14 = vsyncpa [#allocation3], 0  ;;  %s1014_s0 = inlined_call_operand.vmem [shape: f32[1,16,8,1], index: 0, kind: input, shape index: {}]   ;;  %s1015_s1 = inlined_call_operand.vmem [shape: f32[16,1,128], index: 1, kind: input, shape index: {}]   ;;  %s1016_s2 = inlined_call_operand.vmem [shape: f32[1,128], index: 2, kind: input, shape index: {}]   ;;  %s1017_s3 = inlined_call_operand.vmem [shape: bf16[128,128], index: 3, kind: input, shape index: {}]   ;;  %s1018_s4 = inlined_call_operand.hbm [shape: f32[1,128], index: 4, kind: input, shape index: {}]   ;;  %s1019_s5 = inlined_call_operand.vmem [shape: bf16[128,128], index: 5, kind: input, shape index: {}]   ;;  %s1020_s6 = inlined_call_operand.hbm [shape: f32[1,128], index: 6, kind: input, shape index: {}]   ;;  %s1021_s7 = inlined_call_operand.vmem [shape: bf16[16,128], index: 7, kind: input, shape index: {}]   ;;  %s1022_s8 = inlined_call_operand.vmem [shape: f32[16,8], index: 8, kind: input, shape index: {}]   ;;  %s1023_s9 = inlined_call_operand.vmem [shape: f32[1,16,8], index: 9, kind: output, shape index: {}]  }
   0x1   :  { %15 = vsyncpa [#allocation5], 0  ;;  %s768_s30 = smov [#allocation2]   ;;  %s769_s11 = smov [#allocation4]  }
   0x2   :  { %s30_s10 = sshll.u32 %s768_s30, 4  ;;  %s42_s12 = sshll.u32 %s769_s11, 4  ;;  %s31_s10 = int_to_ptr.vmem [resolvable:$true] %s30_s10  ;;  %s43_s12 = int_to_ptr.vmem [resolvable:$true] %s42_s12 }
   0x3   :  { %s732_s13 = scalar_lea.vmem %s31_s10, 16  ;;  %s736_s14 = scalar_lea.vmem %s31_s10, 32 }
   0x4   :  { %p733_p0 = scmp.ne.s32.totalorder %s31_s10, %s732_s13  ;;  %p737_p1 = scmp.lt.s32.totalorder %s31_s10, %s31_s10 }
   0x5   :  { %p738_p2 = scmp.lt.s32.totalorder %s736_s14, %s732_s13 }
   0x7   :  { %p739_p3 = por %p738_p2, %p737_p1 }
   0x9   :  { %p740_p4 = pnand %p739_p3, %p733_p0 }
   0xb   :  { %743 = shalt.err (!%p740_p4)
}
   0xc   :  { %33 = dma.hbm_to_vmem [thread:$0]  %s1018_s4, 16, %s31_s10, [#allocation3]  }
   0xd   :  { %s752_s17 = scalar_lea.vmem %s43_s12, 16  ;;  %s756_s18 = scalar_lea.vmem %s43_s12, 32 }
   0xe   :  { %p753_p5 = scmp.ne.s32.totalorder %s43_s12, %s752_s17  ;;  %p757_p6 = scmp.lt.s32.totalorder %s43_s12, %s43_s12 }
   0xf   :  { %p758_p7 = scmp.lt.s32.totalorder %s756_s18, %s752_s17 }
  0x11   :  { %p759_p8 = por %p758_p7, %p757_p6 }
  0x13   :  { %p760_p9 = pnand %p759_p8, %p753_p5 }
  0x15   :  { %763 = shalt.err (!%p760_p9)
}
  0x16   :  { %45 = dma.hbm_to_vmem [thread:$0]  %s1020_s6, 16, %s43_s12, [#allocation5]  }
  0x17   :  { %764 = dma.done.wait [#allocation3], 16  }
  0x18   :  { %765 = vsyncadd [#allocation3], 4294967280 }
  0x19   :  { %766 = dma.done.wait [#allocation5], 16  }
  0x1a   :  { %767 = vsyncadd [#allocation5], 4294967280  ;;  %v770_v0 = vmov 0   ;;  %v59_v1 = vld [vmem:[%s1014_s0 + $0x10] sm:$0xff]  ;;  %v57_v2 = vld [vmem:[%s1014_s0] sm:$0xff]  ;;  %v771_v14 = vmov 0.0  }
  0x1b   :  { %700 = vset.pattern.permute.xlu1 %v770_v0  ;;  %699 = vset.pattern.permute.xlu0 %v770_v0  ;;  %v60_v3 = vld [vmem:[%s1014_s0 + $0x18] sm:$0xff]  ;;  %v58_v4 = vld [vmem:[%s1014_s0 + $0x8] sm:$0xff]  ;;  %v61_v6 = vld [vmem:[%s1014_s0 + $0x20] sm:$0xff]  ;;  %vm772_vm0 = vmmov 0   ;;  %vm583_vm1 = vcmask 64512  }
  0x1c   :  { %101 = vperm.xlu1 %700, %v59_v1   ;;  %91 = vperm.xlu0 %699, %v57_v2   ;;  %v62_v5 = vld [vmem:[%s1014_s0 + $0x28] sm:$0xff]  ;;  %v64_v7 = vld [vmem:[%s1014_s0 + $0x38] sm:$0xff]  ;;  %v63_v8 = vld [vmem:[%s1014_s0 + $0x30] sm:$0xff] }
  0x1d   :  { %v66_v9 = vld [vmem:[%s1014_s0 + $0x48] sm:$0xff]  ;;  %v65_v10 = vld [vmem:[%s1014_s0 + $0x40] sm:$0xff]  ;;  %v68_v11 = vld [vmem:[%s1014_s0 + $0x58] sm:$0xff]  ;;  %648 = vmatprep.subr.bf16.mxu0 %v771_v14  ;;  %668 = vmatprep.subr.bf16.mxu1 %v771_v14 }
  0x1e   :  { %v67_v12 = vld [vmem:[%s1014_s0 + $0x50] sm:$0xff]  ;;  %v701_v13 = vld [vmem:[%s1017_s3 + $0x38] sm:$0xff]   ;;  %v70_v15 = vld [vmem:[%s1014_s0 + $0x68] sm:$0xff]  ;;  %664 = vmatprep.mubr.msk.bf16.mxu0 %vm772_vm0, %v771_v14  ;;  %684 = vmatprep.mubr.msk.bf16.mxu1 %vm772_vm0, %v771_v14 }
  0x1f   :  { %649 = vmatpush3.bf16.msra.mxu0 %v701_v13  ;;  %v69_v16 = vld [vmem:[%s1014_s0 + $0x60] sm:$0xff]  ;;  %v702_v17 = vld [vmem:[%s1017_s3 + $0x30] sm:$0xff]   ;;  %v72_v18 = vld [vmem:[%s1014_s0 + $0x78] sm:$0xff] }
  0x20   :  { %106 = vperm.xlu1 %700, %v60_v3   ;;  %96 = vperm.xlu0 %699, %v58_v4   ;;  %v71_v19 = vld [vmem:[%s1014_s0 + $0x70] sm:$0xff]  ;;  %v703_v20 = vld [vmem:[%s1017_s3 + $0x28] sm:$0xff]   ;;  %v704_v21 = vld [vmem:[%s1017_s3 + $0x20] sm:$0xff]  }
  0x21   :  { %650 = vmatprep.subr.bf16.mxu0 %v771_v14  ;;  %v705_v22 = vld [vmem:[%s1017_s3 + $0x18] sm:$0xff]   ;;  %v706_v23 = vld [vmem:[%s1017_s3 + $0x10] sm:$0xff]   ;;  %v707_v24 = vld [vmem:[%s1017_s3 + $0x8] sm:$0xff]  }
  0x22   :  { %v708_v25 = vld [vmem:[%s1017_s3] sm:$0xff]   ;;  %v709_v26 = vld [vmem:[%s1019_s5 + $0x38] sm:$0xff]   ;;  %v710_v27 = vld [vmem:[%s1019_s5 + $0x30] sm:$0xff]  }
  0x23   :  { %651 = vmatpush3.bf16.msra.mxu0 %v702_v17  ;;  %669 = vmatpush3.bf16.msra.mxu1 %v709_v26  ;;  %v711_v28 = vld [vmem:[%s1019_s5 + $0x28] sm:$0xff]   ;;  %v592_v31 = vld [vmem:[%s1015_s1] ss:$0 sm:$0xff]  ;;  %v593_v32 = vld [vmem:[%s1015_s1 + $0x1] ss:$0 sm:$0xff] }
  0x24   :  { %116 = vperm.xlu1 %700, %v62_v5   ;;  %111 = vperm.xlu0 %699, %v61_v6   ;;  %v594_v33 = vld [vmem:[%s1015_s1 + $0x2] ss:$0 sm:$0xff]  ;;  %v595_v38 = vld [vmem:[%s1015_s1 + $0x3] ss:$0 sm:$0xff]  ;;  %v596_v42 = vld [vmem:[%s1015_s1 + $0x4] ss:$0 sm:$0xff] }
  0x25   :  { %652 = vmatprep.subr.bf16.mxu0 %v771_v14  ;;  %670 = vmatprep.subr.bf16.mxu1 %v771_v14  ;;  %v597_v46 = vld [vmem:[%s1015_s1 + $0x5] ss:$0 sm:$0xff]  ;;  %v598_v50 = vld [vmem:[%s1015_s1 + $0x6] ss:$0 sm:$0xff]  ;;  %v599_v54 = vld [vmem:[%s1015_s1 + $0x7] ss:$0 sm:$0xff] }
  0x26   :  { %v600_v58 = vld [vmem:[%s1015_s1 + $0x8] ss:$0 sm:$0xff]  ;;  %v601_v62 = vld [vmem:[%s1015_s1 + $0x9] ss:$0 sm:$0xff]  ;;  %v602_v2 = vld [vmem:[%s1015_s1 + $0xa] ss:$0 sm:$0xff] }
  0x27   :  { %653 = vmatpush3.bf16.msra.mxu0 %v703_v20  ;;  %671 = vmatpush3.bf16.msra.mxu1 %v710_v27  ;;  %v603_v6 = vld [vmem:[%s1015_s1 + $0xb] ss:$0 sm:$0xff] }
  0x28   :  { %126 = vperm.xlu1 %700, %v64_v7   ;;  %121 = vperm.xlu0 %699, %v63_v8  }
  0x29   :  { %654 = vmatprep.subr.bf16.mxu0 %v771_v14  ;;  %672 = vmatprep.subr.bf16.mxu1 %v771_v14 }
  0x2b   :  { %655 = vmatpush3.bf16.msra.mxu0 %v704_v21  ;;  %673 = vmatpush3.bf16.msra.mxu1 %v711_v28  ;;  %v608_v28 = vld [vmem:[%s1016_s2] ss:$0 sm:$0xff] }
  0x2c   :  { %136 = vperm.xlu1 %700, %v66_v9   ;;  %131 = vperm.xlu0 %699, %v65_v10   ;;  %v604_v10 = vld [vmem:[%s1015_s1 + $0xc] ss:$0 sm:$0xff] }
  0x2d   :  { %656 = vmatprep.subr.bf16.mxu0 %v771_v14  ;;  %674 = vmatprep.subr.bf16.mxu1 %v771_v14 }
  0x2f   :  { %657 = vmatpush3.bf16.msra.mxu0 %v705_v22  ;;  %v607_v22 = vld [vmem:[%s1015_s1 + $0xf] ss:$0 sm:$0xff] }
  0x30   :  { %146 = vperm.xlu1 %700, %v68_v11   ;;  %141 = vperm.xlu0 %699, %v67_v12  }
  0x31   :  { %658 = vmatprep.subr.bf16.mxu0 %v771_v14 }
  0x33   :  { %659 = vmatpush3.bf16.msra.mxu0 %v706_v23 }
  0x34   :  { %156 = vperm.xlu1 %700, %v70_v15   ;;  %151 = vperm.xlu0 %699, %v69_v16   ;;  %v605_v15 = vld [vmem:[%s1015_s1 + $0xd] ss:$0 sm:$0xff] }
  0x35   :  { %660 = vmatprep.subr.bf16.mxu0 %v771_v14 }
  0x37   :  { %661 = vmatpush3.bf16.msra.mxu0 %v707_v24 }
  0x38   :  { %166 = vperm.xlu1 %700, %v72_v18   ;;  %161 = vperm.xlu0 %699, %v71_v19   ;;  %v606_v18 = vld [vmem:[%s1015_s1 + $0xe] ss:$0 sm:$0xff] }
  0x39   :  { %662 = vmatprep.subr.bf16.mxu0 %v771_v14 }
  0x3b   :  { %663 = vmatpush3.bf16.msra.mxu0 %v708_v25 }
  0x3c   :  { %688 = vmatprep.subr.bf16.mxu0 %v771_v14 }
  0x97   :  { %v102_v29 = vpop.permute.xlu1 %101  ;;  %v92_v30 = vpop.permute.xlu0 %91 }
  0x98   :  { %v265_v36 = vmul.f32 %v592_v31, %v92_v30  ;;  %v267_v39 = vmul.f32 %v594_v33, %v102_v29  ;;  %v712_v33 = vld [vmem:[%s1019_s5 + $0x20] sm:$0xff]  }
  0x99   :  { %675 = vmatpush3.bf16.msra.mxu1 %v712_v33 }
  0x9a   :  { %676 = vmatprep.subr.bf16.mxu1 %v771_v14 }
  0x9b   :  { %v107_v34 = vpop.permute.xlu1 %106  ;;  %v97_v35 = vpop.permute.xlu0 %96 }
  0x9c   :  { %v266_v37 = vmul.f32 %v593_v32, %v97_v35  ;;  %v268_v44 = vmul.f32 %v595_v38, %v107_v34  ;;  %v713_v34 = vld [vmem:[%s1019_s5 + $0x18] sm:$0xff]   ;;  %v714_v35 = vld [vmem:[%s1019_s5 + $0x10] sm:$0xff]   ;;  %v609_v38 = vld [vmem:[#allocation2] ss:$0 sm:$0xff] }
  0x9d   :  { %677 = vmatpush3.bf16.msra.mxu1 %v713_v34 }
  0x9e   :  { %v281_v40 = vadd.f32 %v266_v37, %v265_v36  ;;  %678 = vmatprep.subr.bf16.mxu1 %v771_v14  ;;  %v715_v36 = vld [vmem:[%s1019_s5 + $0x8] sm:$0xff]   ;;  %v716_v37 = vld [vmem:[%s1019_s5] sm:$0xff]  }
  0x9f   :  { %v117_v41 = vpop.permute.xlu1 %116  ;;  %v112_v43 = vpop.permute.xlu0 %111 }
  0xa0   :  { %v282_v45 = vadd.f32 %v281_v40, %v267_v39  ;;  %v269_v48 = vmul.f32 %v596_v42, %v112_v43  ;;  %v270_v52 = vmul.f32 %v597_v46, %v117_v41  ;;  %v618_v46 = vld [vmem:[#allocation4] ss:$0 sm:$0xff] }
  0xa1   :  { %679 = vmatpush3.bf16.msra.mxu1 %v714_v35 }
  0xa2   :  { %v283_v47 = vadd.f32 %v282_v45, %v268_v44  ;;  %680 = vmatprep.subr.bf16.mxu1 %v771_v14 }
  0xa3   :  { %v127_v49 = vpop.permute.xlu1 %126  ;;  %v122_v51 = vpop.permute.xlu0 %121 }
  0xa4   :  { %v284_v53 = vadd.f32 %v283_v47, %v269_v48  ;;  %v271_v56 = vmul.f32 %v598_v50, %v122_v51  ;;  %v272_v60 = vmul.f32 %v599_v54, %v127_v49  ;;  %v534_v54 = vld [vmem:[%s1022_s8] sm:$0xff] }
  0xa5   :  { %681 = vmatpush3.bf16.msra.mxu1 %v715_v36 }
  0xa6   :  { %v285_v55 = vadd.f32 %v284_v53, %v270_v52  ;;  %682 = vmatprep.subr.bf16.mxu1 %v771_v14  ;;  %v717_v53 = vld [vmem:[%s1021_s7] sm:$0xff]  }
  0xa7   :  { %v137_v57 = vpop.permute.xlu1 %136  ;;  %v132_v59 = vpop.permute.xlu0 %131 }
  0xa8   :  { %v286_v61 = vadd.f32 %v285_v55, %v271_v56  ;;  %v273_v0 = vmul.f32 %v600_v58, %v132_v59  ;;  %v274_v4 = vmul.f32 %v601_v62, %v137_v57  ;;  %v535_v58 = vld [vmem:[%s1022_s8 + $0x8] sm:$0xff] }
  0xa9   :  { %683 = vmatpush3.bf16.msra.mxu1 %v716_v37 }
  0xaa   :  { %v287_v63 = vadd.f32 %v286_v61, %v272_v60 }
  0xab   :  { %v147_v1 = vpop.permute.xlu1 %146  ;;  %v142_v3 = vpop.permute.xlu0 %141 }
  0xac   :  { %v288_v5 = vadd.f32 %v287_v63, %v273_v0  ;;  %v275_v8 = vmul.f32 %v602_v2, %v142_v3  ;;  %v276_v12 = vmul.f32 %v603_v6, %v147_v1 }
  0xae   :  { %v289_v7 = vadd.f32 %v288_v5, %v274_v4 }
  0xaf   :  { %v157_v9 = vpop.permute.xlu1 %156  ;;  %v152_v11 = vpop.permute.xlu0 %151 }
  0xb0   :  { %v290_v13 = vadd.f32 %v289_v7, %v275_v8  ;;  %v277_v17 = vmul.f32 %v604_v10, %v152_v11  ;;  %v278_v20 = vmul.f32 %v605_v15, %v157_v9 }
  0xb2   :  { %v291_v16 = vadd.f32 %v290_v13, %v276_v12 }
  0xb3   :  { %v162_v19 = vpop.permute.xlu0 %161  ;;  %v167_v23 = vpop.permute.xlu1 %166 }
  0xb4   :  { %v292_v21 = vadd.f32 %v291_v16, %v277_v17  ;;  %v279_v25 = vmul.f32 %v606_v18, %v162_v19  ;;  %v280_v26 = vmul.f32 %v607_v22, %v167_v23 }
  0xb6   :  { %v293_v24 = vadd.f32 %v292_v21, %v278_v20 }
  0xb8   :  { %v294_v27 = vadd.f32 %v293_v24, %v279_v25 }
  0xba   :  { %v295_v29 = vadd.f32 %v294_v27, %v280_v26 }
  0xbc   :  { %v303_v30 = vadd.f32 %v608_v28, %v295_v29 }
  0xbe   :  { %718 = vtanh.f32 %v303_v30 }
  0xcb   :  { %v719_v31 = vpop.eup %718 }
  0xcc   :  { %v305_v32 = vpack.c.bf16 %v719_v31, %v719_v31 }
  0xce   :  { %665 = vmatmul.mubr.bf16.vlgmr.msra.gmra.mxu0 %v305_v32 }
  0xcf   :  { %690 = vmatprep.mubr.msk.bf16.mxu0 %vm772_vm0, %v771_v14 }
 0x18e   :  { %v411_v39 = vpop.f32.mrf.mxu0 }
 0x18f   :  { %v412_v40 = vadd.f32 %v609_v38, %v411_v39 }
 0x190   :  { %v666_v41 = vpop.f32.mrf.mxu0 }
 0x191   :  { %720 = vtanh.f32 %v412_v40 }
 0x192   :  { %v414_v42 = vpop.f32.mrf.mxu0 }
 0x194   :  { %v667_v43 = vpop.f32.mrf.mxu0 }
 0x19e   :  { %v721_v44 = vpop.eup %720 }
 0x19f   :  { %v418_v45 = vpack.c.bf16 %v721_v44, %v721_v44 }
 0x1a1   :  { %685 = vmatmul.mubr.bf16.vlgmr.msra.gmra.mxu1 %v418_v45 }
 0x261   :  { %v524_v47 = vpop.f32.mrf.mxu1 }
 0x262   :  { %v525_v48 = vadd.f32 %v618_v46, %v524_v47 }
 0x263   :  { %v686_v49 = vpop.f32.mrf.mxu1 }
 0x264   :  { %722 = vtanh.f32 %v525_v48 }
 0x265   :  { %v527_v50 = vpop.f32.mrf.mxu1 }
 0x267   :  { %v687_v51 = vpop.f32.mrf.mxu1 }
 0x271   :  { %v723_v52 = vpop.eup %722 }
 0x272   :  { %v533_v14 = vpack.c.bf16 %v723_v52, %v723_v52 }
 0x274   :  { %689 = vmatpush3.bf16.xpose.msra.mxu0 %v533_v14 }
 0x27b   :  { %691 = vmatmul.mubr.bf16.vlgmr.msra.gmra.mxu0 %v717_v53 }
 0x33b   :  { %v576_v55 = vpop.f32.mrf.mxu0 }
 0x33c   :  { %v577_v56 = vadd.f32 %v576_v55, %v534_v54 }
 0x33d   :  { %v692_v57 = vpop.f32.mrf.mxu0 }
 0x33e   :  { %584 = vst.msk [vmem:[%s1023_s9] sm:$0xff] %vm583_vm1, %v577_v56 }
 0x33f   :  { %v579_v59 = vpop.f32.mrf.mxu0 }
 0x340   :  { %v580_v60 = vadd.f32 %v579_v59, %v535_v58 }
 0x341   :  { %v693_v61 = vpop.f32.mrf.mxu0 }
 0x342   :  { %585 = vst.msk [vmem:[%s1023_s9 + $0x8] sm:$0xff] %vm583_vm1, %v580_v60 }
 0x343   :  { %590 = vsyncpa [#allocation3], 1 }
 0x344   :  { %591 = vsyncpa [#allocation5], 1 }

</bundles_post_ra>
